<compile_context>
chip_gen: v7x
topology: tpu7x:2x2x1
jax: 0.10.0
libtpu: 0.0.40
codegen_flags: <defaults>
</compile_context>

<pallas_src>
import jax
import jax.numpy as jnp
from jax import lax
from jax.experimental import pallas as pl
from jax.experimental.pallas import tpu as pltpu


def mlp_kernel(x_ref, w1t_ref, b1_ref, w2_ref, b2_ref, o_ref):
    # x_ref: (tile_b, D_in) f32, natural layout.  Cast to bf16 in-kernel
    # (~50 VPU cycles per tile, hidden under DMA).
    x_bf = x_ref[...].astype(jnp.bfloat16)

    # fc1 computed transposed: contract D_in of both operands,
    # (H, D_in) . (tile_b, D_in) -> (H, tile_b), f32 accumulation on the MXU.
    ht = lax.dot_general(
        w1t_ref[...], x_bf,
        dimension_numbers=(((1,), (1,)), ((), ())),
        preferred_element_type=jnp.float32,
    )
    ht = jnp.maximum(ht + b1_ref[...], 0.0)                   # bias + ReLU, f32

    # dropout: nn.Dropout is identity in eval-mode forward.

    # fc2 (H -> 1): VPU multiply + sublane reduction (no N=1 MXU matmul);
    # result is already a lane-dense (1, tile_b) row.
    logit = jnp.sum(ht * w2_ref[...], axis=0, keepdims=True)  # (1, tile_b)
    logit = logit + b2_ref[0]                                 # scalar bias (SMEM)
    prob = jax.nn.sigmoid(logit)                              # EUP, f32

    o_ref[...] = prob.reshape(o_ref.shape).astype(o_ref.dtype)


def _plan_batch(B):
    """Return (B_padded, tile_b, num_tiles)."""
    if B <= 128:
        # Single grid step; block == full array, no padding needed.
        return B, B, 1
    # Pad to a multiple of 128 so every block is 128-lane aligned and VMEM
    # per tile stays bounded on every generation (incl. v7x's 64 MiB).
    B_pad = ((B + 127) // 128) * 128
    # Prefer the largest tile (512+ ~85% of HBM roofline vs ~63% at 256) while
    # guaranteeing >= 2 grid steps so v7x's two TensorCores both get work.
    for t in (1024, 512, 256, 128):
        if B_pad % t == 0 and B_pad // t >= 2:
            return B_pad, t, B_pad // t
    return B_pad, B_pad, 1   # unreachable: B_pad is a multiple of 128


def prepare_params(w1, b1, w2, b2):
    """One-time parameter preprocessing (hoisted out of the per-call path)."""
    D_in, H = w1.shape
    w1t = jnp.asarray(w1, jnp.bfloat16).T          # (H, D_in) bf16, resident
    b1c = jnp.asarray(b1, jnp.float32).reshape(H, 1)
    w2c = jnp.asarray(w2, jnp.float32).reshape(H, 1)
    b2s = jnp.asarray(b2, jnp.float32).reshape(1)  # scalar -> SMEM
    return w1t, b1c, w2c, b2s


def mlp_forward(x, w1t, b1c, w2c, b2s):
    B, D_in = x.shape
    H = w1t.shape[0]
    B_pad, tile_b, num_tiles = _plan_batch(B)
    if B_pad != B:
        x = jnp.pad(x, ((0, B_pad - B), (0, 0)))

    cost = pl.CostEstimate(
        flops=2 * B_pad * D_in * H + 2 * B_pad * H,
        transcendentals=B_pad,                      # one exp per sigmoid
        bytes_accessed=(x.size * x.dtype.itemsize + w1t.size * 2
                        + (b1c.size + w2c.size + b2s.size) * 4 + B_pad * 4),
    )

    out = pl.pallas_call(
        mlp_kernel,
        out_shape=jax.ShapeDtypeStruct((num_tiles, 1, tile_b), jnp.float32),
        grid_spec=pltpu.PrefetchScalarGridSpec(
            num_scalar_prefetch=0,
            grid=(num_tiles,),
            in_specs=[
                pl.BlockSpec((tile_b, D_in), lambda i: (i, 0)),   # x, natural layout
                pl.BlockSpec((H, D_in), lambda i: (0, 0)),        # W1^T resident (bf16)
                pl.BlockSpec((H, 1), lambda i: (0, 0)),           # b1 column (f32)
                pl.BlockSpec((H, 1), lambda i: (0, 0)),           # w2 column (f32)
                pl.BlockSpec(memory_space=pltpu.SMEM),            # b2 scalar
            ],
            out_specs=pl.BlockSpec((1, 1, tile_b), lambda i: (i, 0, 0)),
        ),
        compiler_params=pltpu.CompilerParams(
            dimension_semantics=("parallel",),
        ),
        cost_estimate=cost,
    )(x, w1t, b1c, w2c, b2s)

    return out.reshape(-1)[:B]   # matches torch .view(-1); drop batch padding


if __name__ == "__main__":
    # Module defaults: input_dim=768, hidden_dim=256. Small batch.
    B, D_in, H = 16, 768, 256

    key = jax.random.PRNGKey(0)
    kx, k1, kb1, k2, kb2, kx2 = jax.random.split(key, 6)

    x = jax.random.normal(kx, (B, D_in), dtype=jnp.float32)

    # Deterministic parameter init (uniform, scaled like torch Linear default).
    bound1 = 1.0 / (D_in ** 0.5)
    w1 = jax.random.uniform(k1, (D_in, H), jnp.float32, -bound1, bound1)
    b1 = jax.random.uniform(kb1, (H,), jnp.float32, -bound1, bound1)
    bound2 = 1.0 / (H ** 0.5)
    w2 = jax.random.uniform(k2, (H, 1), jnp.float32, -bound2, bound2)
    b2 = jax.random.uniform(kb2, (1,), jnp.float32, -bound2, bound2)

    params = prepare_params(w1, b1, w2, b2)   # one-time cast / transpose

    y = mlp_forward(x, *params)
    jax.block_until_ready(y)
    assert y.shape == (B,)

    # Reference matching the kernel's bf16 fc1 matmul (f32 accumulation).
    def ref_bf16(xv):
        h = jnp.maximum(
            jnp.dot(xv.astype(jnp.bfloat16), w1.astype(jnp.bfloat16),
                    preferred_element_type=jnp.float32) + b1, 0.0)
        return jax.nn.sigmoid(h @ w2 + b2).reshape(-1)

    y_ref = ref_bf16(x)
    assert jnp.allclose(y, y_ref, atol=1e-3, rtol=1e-3), \
        float(jnp.max(jnp.abs(y - y_ref)))

    # Looser sanity check against pure-f32 math (bf16 fc1 adds tiny error).
    h32 = jnp.maximum(x @ w1 + b1, 0.0)
    y32 = jax.nn.sigmoid(h32 @ w2 + b2).reshape(-1)
    assert jnp.allclose(y, y32, atol=3e-2)

    # Exercise the padded, multi-tile (>=2 grid steps) path.
    B2 = 300
    x2 = jax.random.normal(kx2, (B2, D_in), dtype=jnp.float32)
    y2 = mlp_forward(x2, *params)
    jax.block_until_ready(y2)
    assert y2.shape == (B2,)
    y2_ref = ref_bf16(x2)
    assert jnp.allclose(y2, y2_ref, atol=1e-3, rtol=1e-3), \
        float(jnp.max(jnp.abs(y2 - y2_ref)))

    print("KERNEL_OK")
</pallas_src>

<mosaic_0001>
module attributes {stable_mosaic.version = 11 : i64} {
  func.func @mlp_kernel(%arg0: i32, %arg1: memref<16x768xf32, #tpu.memory_space<vmem>>, %arg2: memref<256x768xbf16, #tpu.memory_space<vmem>>, %arg3: memref<256x1xf32, #tpu.memory_space<vmem>>, %arg4: memref<256x1xf32, #tpu.memory_space<vmem>>, %arg5: memref<1xf32, #tpu.memory_space<smem>>, %arg6: memref<1x1x16xf32, #tpu.memory_space<vmem>>) attributes {dimension_semantics = [#tpu.dimension_semantics<parallel>], iteration_bounds = array<i64: 1>, scalar_prefetch = 0 : i64, scratch_operands = 0 : i64, tpu.core_type = #tpu.core_type<tc>, window_params = [{transform_indices = @transform_0, window_bounds = array<i64: 16, 768>}, {pipeline_mode = #tpu.pipeline_mode<synchronous>, transform_indices = @transform_1, window_bounds = array<i64: 256, 768>}, {pipeline_mode = #tpu.pipeline_mode<synchronous>, transform_indices = @transform_2, window_bounds = array<i64: 256, 1>}, {pipeline_mode = #tpu.pipeline_mode<synchronous>, transform_indices = @transform_3, window_bounds = array<i64: 256, 1>}, {transform_indices = @transform_4, window_bounds = array<i64: 1>}, {transform_indices = @transform_5, window_bounds = array<i64: 1, 1, 16>}]} {
    %c0 = arith.constant 0 : index
    %c0_0 = arith.constant 0 : index
    %0 = vector.load %arg1[%c0, %c0_0] : memref<16x768xf32, #tpu.memory_space<vmem>>, vector<16x768xf32>
    %1 = arith.truncf %0 : vector<16x768xf32> to vector<16x768xbf16>
    %c0_1 = arith.constant 0 : index
    %c0_2 = arith.constant 0 : index
    %2 = vector.load %arg2[%c0_1, %c0_2] : memref<256x768xbf16, #tpu.memory_space<vmem>>, vector<256x768xbf16>
    %cst = arith.constant dense<0.000000e+00> : vector<256x16xf32>
    %3 = tpu.matmul %2, %1, %cst {dimension_numbers = #tpu.dot_dimension_numbers<[1], [1], [0], [0], [0, 0, 1, 0], [], []>} : vector<256x768xbf16>, vector<16x768xbf16>, vector<256x16xf32> -> vector<256x16xf32>
    %c0_3 = arith.constant 0 : index
    %c0_4 = arith.constant 0 : index
    %4 = vector.load %arg3[%c0_3, %c0_4] : memref<256x1xf32, #tpu.memory_space<vmem>>, vector<256x1xf32>
    %5 = vector.broadcast %4 : vector<256x1xf32> to vector<256x16xf32>
    %6 = arith.addf %3, %5 : vector<256x16xf32>
    %cst_5 = arith.constant 0.000000e+00 : f32
    %7 = vector.broadcast %cst_5 : f32 to vector<256x16xf32>
    %8 = arith.maximumf %6, %7 : vector<256x16xf32>
    %c0_6 = arith.constant 0 : index
    %c0_7 = arith.constant 0 : index
    %9 = vector.load %arg4[%c0_6, %c0_7] : memref<256x1xf32, #tpu.memory_space<vmem>>, vector<256x1xf32>
    %10 = vector.broadcast %9 : vector<256x1xf32> to vector<256x16xf32>
    %11 = arith.mulf %8, %10 : vector<256x16xf32>
    %cst_8 = arith.constant dense<0.000000e+00> : vector<16xf32>
    %12 = vector.multi_reduction <add>, %11, %cst_8 [0] : vector<256x16xf32> to vector<16xf32>
    %13 = vector.shape_cast %12 : vector<16xf32> to vector<1x16xf32>
    %c0_9 = arith.constant 0 : index
    %14 = memref.load %arg5[%c0_9] : memref<1xf32, #tpu.memory_space<smem>>
    %15 = vector.broadcast %14 : f32 to vector<1x16xf32>
    %16 = arith.addf %13, %15 : vector<1x16xf32>
    %17 = arith.negf %16 : vector<1x16xf32>
    %18 = math.exp %17 : vector<1x16xf32>
    %cst_10 = arith.constant 1.000000e+00 : f32
    %19 = vector.broadcast %cst_10 : f32 to vector<1x16xf32>
    %20 = arith.addf %19, %18 : vector<1x16xf32>
    %21 = arith.divf %19, %20 : vector<1x16xf32>
    %22 = vector.shape_cast %21 : vector<1x16xf32> to vector<1x1x16xf32>
    %c0_11 = arith.constant 0 : index
    %c0_12 = arith.constant 0 : index
    %c0_13 = arith.constant 0 : index
    %23 = vector.load %arg6[%c0_11, %c0_12, %c0_13] : memref<1x1x16xf32, #tpu.memory_space<vmem>>, vector<1x1x16xf32>
    tpu.vector_store %arg6[%c0_11, %c0_12, %c0_13], %22 {strides = array<i32>} : memref<1x1x16xf32, #tpu.memory_space<vmem>>, vector<1x1x16xf32>,
    return
  }
  func.func @transform_0(%arg0: i32) -> (i32, i32) {
    %c0_i32 = arith.constant 0 : i32
    %c0_i32_0 = arith.constant 0 : i32
    return %arg0, %c0_i32 : i32, i32
  }
  func.func @transform_1(%arg0: i32) -> (i32, i32) {
    %c0_i32 = arith.constant 0 : i32
    %c0_i32_0 = arith.constant 0 : i32
    %c0_i32_1 = arith.constant 0 : i32
    return %c0_i32, %c0_i32_0 : i32, i32
  }
  func.func @transform_2(%arg0: i32) -> (i32, i32) {
    %c0_i32 = arith.constant 0 : i32
    %c0_i32_0 = arith.constant 0 : i32
    %c0_i32_1 = arith.constant 0 : i32
    return %c0_i32, %c0_i32_0 : i32, i32
  }
  func.func @transform_3(%arg0: i32) -> (i32, i32) {
    %c0_i32 = arith.constant 0 : i32
    %c0_i32_0 = arith.constant 0 : i32
    %c0_i32_1 = arith.constant 0 : i32
    return %c0_i32, %c0_i32_0 : i32, i32
  }
  func.func @transform_4(%arg0: i32) -> i32 {
    %c0_i32 = arith.constant 0 : i32
    %c0_i32_0 = arith.constant 0 : i32
    return %c0_i32 : i32
  }
  func.func @transform_5(%arg0: i32) -> (i32, i32, i32) {
    %c0_i32 = arith.constant 0 : i32
    %c0_i32_0 = arith.constant 0 : i32
    %c0_i32_1 = arith.constant 0 : i32
    return %arg0, %c0_i32, %c0_i32_0 : i32, i32, i32
  }
}

</mosaic_0001>

<bundles_post_ra>
// kernel: tpu_custom_call.1
= control target key start
LH: loop header
LB: loop body
LE: loop exit
PB: predicated region body
PF: predicated region fallthrough
CT: control target
= control target key end

     0   :  { %11 = vsyncpa [#allocation4], 0  ;;  %s2563_s0 = inlined_call_operand.vmem [shape: f32[16,768], index: 0, kind: input, shape index: {}]   ;;  %s2564_s1 = inlined_call_operand.hbm [shape: bf16[256,768], index: 1, kind: input, shape index: {}]   ;;  %s2565_s2 = inlined_call_operand.vmem [shape: f32[256,1], index: 2, kind: input, shape index: {}]   ;;  %s2566_s3 = inlined_call_operand.vmem [shape: f32[256,1], index: 3, kind: input, shape index: {}]   ;;  %s2567_s4 = inlined_call_operand.<no memory space> [shape: f32[1], index: 4, kind: input, shape index: {}]   ;;  %s2568_s5 = inlined_call_operand.hbm [shape: f32[1,1,16], index: 5, kind: output, shape index: {}]  }
   0x1   :  { %12 = vsyncpa [#allocation5], 0  ;;  %s2088_s18 = smov [#allocation3]   ;;  %s2040_s22 = scalar_lea.hbm %s2564_s1, 12288 }
   0x2   :  { %s20_s19 = sshll.u32 %s2088_s18, 4  ;;  %p2041_p0 = scmp.ne.s32.totalorder %s2564_s1, %s2040_s22  ;;  %s21_s19 = int_to_ptr.vmem [resolvable:$true] %s20_s19 }
   0x3   :  { %p2044_p1 = scmp.lt.u32.totalorder %s2040_s22, %s2564_s1 }
   0x5   :  { %p2046_p2 = pnand %p2044_p1, %p2041_p0 }
   0x7   :  { %2049 = shalt.err (!%p2046_p2)
}
   0x8   :  { %s2050_s27 = scalar_lea.vmem %s21_s19, 12288  ;;  %p2055_p4 = scmp.lt.s32.totalorder %s21_s19, %s21_s19 }
   0x9   :  { %p2051_p3 = scmp.ne.s32.totalorder %s21_s19, %s2050_s27  ;;  %p2056_p5 = scmp.lt.s32.totalorder %s2050_s27, %s2050_s27 }
   0xb   :  { %p2057_p6 = por %p2056_p5, %p2055_p4 }
   0xd   :  { %p2058_p7 = pnand %p2057_p6, %p2051_p3 }
   0xf   :  { %2061 = shalt.err (!%p2058_p7)
}
  0x10   :  { %s2089_s28 = smov 384   ;;  %s2090_s29 = smov 24  }
  0x11   :  { %26 = dma.hbm_to_vmem [thread:$0]  %s2564_s1, 12288, %s21_s19, [#allocation4], %s2089_s28, %s2089_s28, %s2090_s29  }
  0x12   :  { %2084 = dma.done.wait [#allocation4], 12288  }
  0x13   :  { %2085 = vsyncadd [#allocation4], 4294955008  ;;  %v2091_v0 = vmov 0   ;;  %v38_v1 = vld [vmem:[%s2563_s0 + $0x8] sm:$0xff]  ;;  %v44_v2 = vld [vmem:[%s2563_s0 + $0x38] sm:$0xff]  ;;  %vm1562_vm0 = vcmask 130048  }
  0x14   :  { %1890 = vset.pattern.permute.xlu0 %v2091_v0  ;;  %1891 = vset.pattern.permute.xlu1 %v2091_v0  ;;  %v40_v3 = vld [vmem:[%s2563_s0 + $0x18] sm:$0xff]  ;;  %v50_v4 = vpack.c.bf16 %v44_v2, %v38_v1  ;;  %v46_v5 = vld [vmem:[%s2563_s0 + $0x48] sm:$0xff]  ;;  %v37_v6 = vld [vmem:[%s2563_s0] sm:$0xff]  ;;  %s2092_s23 = smov [#allocation6]   ;;  %vm1641_vm1 = vcmask 122880  }
  0x15   :  { %v43_v7 = vld [vmem:[%s2563_s0 + $0x30] sm:$0xff]  ;;  %v52_v8 = vpack.c.bf16 %v46_v5, %v40_v3  ;;  %v45_v11 = vld [vmem:[%s2563_s0 + $0x40] sm:$0xff]  ;;  %v42_v15 = vld [vmem:[%s2563_s0 + $0x28] sm:$0xff]  ;;  %s1649_s24 = sshll.u32 %s2092_s23, 4  ;;  %s1650_s24 = int_to_ptr.vmem [resolvable:$true] %s1649_s24 }
  0x16   :  { %v49_v9 = vpack.c.bf16 %v43_v7, %v37_v6  ;;  %v39_v10 = vld [vmem:[%s2563_s0 + $0x10] sm:$0xff]  ;;  %823 = vmatprep.subr.bf16.mxu1 %v50_v4  ;;  %v1894_v13 = vld [vmem:[#allocation3 + $0x4] ss:$24 sps:$4 sm:$0xff]   ;;  %v1892_v20 = vld [vmem:[#allocation3] ss:$24 sps:$4 sm:$0xff]   ;;  %s2062_s25 = scalar_lea.vmem %s1650_s24, 16  ;;  %p2067_p9 = scmp.lt.s32.totalorder %s1650_s24, %s1650_s24 }
  0x17   :  { %v51_v12 = vpack.c.bf16 %v45_v11, %v39_v10  ;;  %984 = vmatprep.subr.bf16.mxu0 %v52_v8  ;;  %855 = vmatprep.mubr.bf16.mxu1 %v1894_v13  ;;  %v1897_v14 = vld [vmem:[#allocation3 + $0xc] ss:$24 sps:$4 sm:$0xff]   ;;  %v48_v16 = vld [vmem:[%s2563_s0 + $0x58] sm:$0xff]  ;;  %v47_v19 = vld [vmem:[%s2563_s0 + $0x50] sm:$0xff]  ;;  %p2063_p8 = scmp.ne.s32.totalorder %s1650_s24, %s2062_s25  ;;  %s2066_s26 = scalar_lea.vmem %s1650_s24, 32 }
  0x18   :  { %824 = vmatpush1.bf16.xpose.msra.mxu1 %v49_v9  ;;  %v54_v17 = vpack.c.bf16 %v48_v16, %v42_v15  ;;  %v41_v18 = vld [vmem:[%s2563_s0 + $0x20] sm:$0xff]  ;;  %1016 = vmatprep.mubr.bf16.mxu0 %v1897_v14  ;;  %v1898_v23 = vld [vmem:[#allocation3 + $0x34] ss:$24 sps:$4 sm:$0xff]   ;;  %v1902_v25 = vld [vmem:[#allocation3 + $0x30] ss:$24 sps:$4 sm:$0xff]   ;;  %p2068_p10 = scmp.lt.s32.totalorder %s2066_s26, %s2062_s25 }
  0x19   :  { %985 = vmatpush1.bf16.xpose.msra.mxu0 %v51_v12  ;;  %1755 = vmatprep.subr.bf16.mxu1 %v52_v8  ;;  %v1895_v21 = vld [vmem:[#allocation3 + $0x8] ss:$24 sps:$4 sm:$0xff]   ;;  %v53_v22 = vpack.c.bf16 %v47_v19, %v41_v18  ;;  %v1900_v24 = vld [vmem:[#allocation3 + $0x3c] ss:$24 sps:$4 sm:$0xff]   ;;  %v1903_v26 = vld [vmem:[#allocation3 + $0x38] ss:$24 sps:$4 sm:$0xff]  }
  0x1a   :  { %1145 = vmatprep.subr.bf16.mxu0 %v54_v17  ;;  %v151_v27 = vld [vmem:[%s2565_s2] sm:$0xff]  ;;  %v153_v29 = vld [vmem:[%s2565_s2 + $0x10] sm:$0xff]  ;;  %v152_v30 = vld [vmem:[%s2565_s2 + $0x8] sm:$0xff]  ;;  %p2069_p11 = por %p2068_p10, %p2067_p9 }
  0x1b   :  { %v1904_v28 = vld [vmem:[#allocation3 + $0x64] ss:$24 sps:$4 sm:$0xff]   ;;  %185 = vperm.xlu0 %1890, %v151_v27   ;;  %195 = vperm.xlu1 %1891, %v153_v29   ;;  %v1908_v34 = vld [vmem:[#allocation3 + $0x60] ss:$24 sps:$4 sm:$0xff]   ;;  %v156_v35 = vld [vmem:[%s2565_s2 + $0x28] sm:$0xff] }
  0x1c   :  { %v1906_v31 = vld [vmem:[#allocation3 + $0x6c] ss:$24 sps:$4 sm:$0xff]   ;;  %v154_v32 = vld [vmem:[%s2565_s2 + $0x18] sm:$0xff]  ;;  %v1909_v36 = vld [vmem:[#allocation3 + $0x68] ss:$24 sps:$4 sm:$0xff]   ;;  %p2070_p12 = pnand %p2069_p11, %p2063_p8 }
  0x1d   :  { %v155_v33 = vld [vmem:[%s2565_s2 + $0x20] sm:$0xff]  ;;  %v1910_v37 = vld [vmem:[#allocation3 + $0x94] ss:$24 sps:$4 sm:$0xff]   ;;  %v158_v40 = vld [vmem:[%s2565_s2 + $0x38] sm:$0xff] }
  0x1e   :  { %v157_v38 = vld [vmem:[%s2565_s2 + $0x30] sm:$0xff]  ;;  %v159_v41 = vld [vmem:[%s2565_s2 + $0x40] sm:$0xff]  ;;  %v160_v43 = vld [vmem:[%s2565_s2 + $0x48] sm:$0xff] }
  0x1f   :  { %856 = vmatmul.mubr.bf16.vlgmr.msra.gmra.mrb[0].mxu1 %v1892_v20  ;;  %190 = vperm.xlu0 %1890, %v152_v30   ;;  %v1912_v39 = vld [vmem:[#allocation3 + $0x9c] ss:$24 sps:$4 sm:$0xff]   ;;  %v1914_v42 = vld [vmem:[#allocation3 + $0x90] ss:$24 sps:$4 sm:$0xff]   ;;  %v1918_v47 = vld [vmem:[#allocation3 + $0xcc] ss:$24 sps:$4 sm:$0xff]  }
  0x20   :  { %1017 = vmatmul.mubr.bf16.vlgmr.msra.gmra.mrb[0].mxu0 %v1895_v21  ;;  %1756 = vmatpush1.bf16.xpose.msra.mxu1 %v51_v12  ;;  %v1915_v44 = vld [vmem:[#allocation3 + $0x98] ss:$24 sps:$4 sm:$0xff]   ;;  %v1916_v45 = vld [vmem:[#allocation3 + $0xc4] ss:$24 sps:$4 sm:$0xff]   ;;  %v164_v51 = vld [vmem:[%s2565_s2 + $0x68] sm:$0xff] }
  0x21   :  { %1146 = vmatpush1.bf16.xpose.msra.mxu0 %v53_v22  ;;  %863 = vmatprep.mubr.bf16.mxu1 %v1898_v23  ;;  %v161_v46 = vld [vmem:[%s2565_s2 + $0x50] sm:$0xff]  ;;  %v162_v48 = vld [vmem:[%s2565_s2 + $0x58] sm:$0xff]  ;;  %v163_v49 = vld [vmem:[%s2565_s2 + $0x60] sm:$0xff] }
  0x22   :  { %1024 = vmatprep.mubr.bf16.mxu0 %v1900_v24  ;;  %200 = vperm.xlu1 %1891, %v154_v32   ;;  %v1920_v50 = vld [vmem:[#allocation3 + $0xc0] ss:$24 sps:$4 sm:$0xff]   ;;  %v1922_v53 = vld [vmem:[#allocation3 + $0xf4] ss:$24 sps:$4 sm:$0xff]   ;;  %v1926_v58 = vld [vmem:[#allocation3 + $0xf0] ss:$24 sps:$4 sm:$0xff]  }
  0x23   :  { %205 = vperm.xlu0 %1890, %v155_v33   ;;  %v1921_v52 = vld [vmem:[#allocation3 + $0xc8] ss:$24 sps:$4 sm:$0xff]   ;;  %v165_v54 = vld [vmem:[%s2565_s2 + $0x70] sm:$0xff]  ;;  %v166_v56 = vld [vmem:[%s2565_s2 + $0x78] sm:$0xff] }
  0x24   :  { %v1924_v55 = vld [vmem:[#allocation3 + $0xfc] ss:$24 sps:$4 sm:$0xff]   ;;  %v167_v57 = vld [vmem:[%s2565_s2 + $0x80] sm:$0xff]  ;;  %v168_v59 = vld [vmem:[%s2565_s2 + $0x88] sm:$0xff] }
  0x25   :  { %v1927_v60 = vld [vmem:[#allocation3 + $0xf8] ss:$24 sps:$4 sm:$0xff]   ;;  %v1928_v61 = vld [vmem:[#allocation3 + $0x124] ss:$24 sps:$4 sm:$0xff]   ;;  %v172_v3 = vld [vmem:[%s2565_s2 + $0xa8] sm:$0xff] }
  0x26   :  { %210 = vperm.xlu1 %1891, %v156_v35   ;;  %v169_v62 = vld [vmem:[%s2565_s2 + $0x90] sm:$0xff]  ;;  %v1930_v63 = vld [vmem:[#allocation3 + $0x12c] ss:$24 sps:$4 sm:$0xff]   ;;  %v170_v0 = vld [vmem:[%s2565_s2 + $0x98] sm:$0xff] }
  0x27   :  { %864 = vmatmul.mubr.bf16.gmra.mrb[4].mxu1 %v1902_v25  ;;  %215 = vperm.xlu0 %1890, %v157_v38   ;;  %v171_v1 = vld [vmem:[%s2565_s2 + $0xa0] sm:$0xff]  ;;  %v1934_v5 = vld [vmem:[#allocation3 + $0x154] ss:$24 sps:$4 sm:$0xff]   ;;  %v1341_v10 = vld [vmem:[%s2566_s3 + $0x18] sm:$0xff] }
  0x28   :  { %1025 = vmatmul.mubr.bf16.gmra.mrb[4].mxu0 %v1903_v26  ;;  %871 = vmatprep.mubr.bf16.mxu1 %v1904_v28  ;;  %v1932_v2 = vld [vmem:[#allocation3 + $0x120] ss:$24 sps:$4 sm:$0xff]   ;;  %v1936_v7 = vld [vmem:[#allocation3 + $0x15c] ss:$24 sps:$4 sm:$0xff]   ;;  %v1339_v8 = vld [vmem:[%s2566_s3 + $0x8] sm:$0xff] }
  0x29   :  { %1032 = vmatprep.mubr.bf16.mxu0 %v1906_v31  ;;  %v1933_v4 = vld [vmem:[#allocation3 + $0x128] ss:$24 sps:$4 sm:$0xff]   ;;  %v1340_v9 = vld [vmem:[%s2566_s3 + $0x10] sm:$0xff]  ;;  %v1940_v13 = vld [vmem:[#allocation3 + $0x184] ss:$24 sps:$4 sm:$0xff]  }
  0x2a   :  { %220 = vperm.xlu1 %1891, %v158_v40   ;;  %v1338_v6 = vld [vmem:[%s2566_s3] sm:$0xff]  ;;  %v1938_v11 = vld [vmem:[#allocation3 + $0x150] ss:$24 sps:$4 sm:$0xff]   ;;  %v1944_v15 = vld [vmem:[#allocation3 + $0x14] ss:$24 sps:$4 sm:$0xff]  }
  0x2b   :  { %225 = vperm.xlu0 %1890, %v159_v41   ;;  %v1939_v12 = vld [vmem:[#allocation3 + $0x158] ss:$24 sps:$4 sm:$0xff]   ;;  %v1342_v14 = vld [vmem:[%s2566_s3 + $0x20] sm:$0xff]  ;;  %v1343_v16 = vld [vmem:[%s2566_s3 + $0x28] sm:$0xff] }
  0x2c   :  { %v1344_v17 = vld [vmem:[%s2566_s3 + $0x30] sm:$0xff]  ;;  %v1345_v19 = vld [vmem:[%s2566_s3 + $0x38] sm:$0xff]  ;;  %v1346_v22 = vld [vmem:[%s2566_s3 + $0x40] sm:$0xff] }
  0x2d   :  { %v1942_v18 = vld [vmem:[#allocation3 + $0x10] ss:$24 sps:$4 sm:$0xff]   ;;  %v1945_v20 = vld [vmem:[#allocation3 + $0x180] ss:$24 sps:$4 sm:$0xff]   ;;  %v1946_v21 = vld [vmem:[#allocation3 + $0x1b4] ss:$24 sps:$4 sm:$0xff]  }
  0x2e   :  { %230 = vperm.xlu1 %1891, %v160_v43   ;;  %v1948_v23 = vld [vmem:[#allocation3 + $0x44] ss:$24 sps:$4 sm:$0xff]   ;;  %v1347_v24 = vld [vmem:[%s2566_s3 + $0x48] sm:$0xff]  ;;  %v1348_v25 = vld [vmem:[%s2566_s3 + $0x50] sm:$0xff] }
  0x2f   :  { %872 = vmatmul.mubr.bf16.gmra.mrb[8].mxu1 %v1908_v34  ;;  %235 = vperm.xlu0 %1890, %v161_v46   ;;  %v1950_v26 = vld [vmem:[#allocation3 + $0x1b0] ss:$24 sps:$4 sm:$0xff]   ;;  %v1349_v27 = vld [vmem:[%s2566_s3 + $0x58] sm:$0xff]  ;;  %v1350_v30 = vld [vmem:[%s2566_s3 + $0x60] sm:$0xff] }
  0x30   :  { %1033 = vmatmul.mubr.bf16.gmra.mrb[8].mxu0 %v1909_v36  ;;  %879 = vmatprep.mubr.bf16.mxu1 %v1910_v37  ;;  %v1951_v28 = vld [vmem:[#allocation3 + $0x40] ss:$24 sps:$4 sm:$0xff]   ;;  %v1952_v29 = vld [vmem:[#allocation3 + $0x1e4] ss:$24 sps:$4 sm:$0xff]   ;;  %v1954_v31 = vld [vmem:[#allocation3 + $0x74] ss:$24 sps:$4 sm:$0xff]  }
  0x31   :  { %1040 = vmatprep.mubr.bf16.mxu0 %v1912_v39  ;;  %v1351_v32 = vld [vmem:[%s2566_s3 + $0x68] sm:$0xff]  ;;  %v1352_v33 = vld [vmem:[%s2566_s3 + $0x70] sm:$0xff]  ;;  %v1956_v34 = vld [vmem:[#allocation3 + $0x1e0] ss:$24 sps:$4 sm:$0xff]  }
  0x32   :  { %240 = vperm.xlu1 %1891, %v162_v48   ;;  %v1353_v35 = vld [vmem:[%s2566_s3 + $0x78] sm:$0xff]  ;;  %v1957_v36 = vld [vmem:[#allocation3 + $0x70] ss:$24 sps:$4 sm:$0xff]   ;;  %v1958_v37 = vld [vmem:[#allocation3 + $0x214] ss:$24 sps:$4 sm:$0xff]  }
  0x33   :  { %245 = vperm.xlu0 %1890, %v163_v49   ;;  %v1354_v38 = vld [vmem:[%s2566_s3 + $0x80] sm:$0xff]  ;;  %v1355_v40 = vld [vmem:[%s2566_s3 + $0x88] sm:$0xff]  ;;  %v1356_v41 = vld [vmem:[%s2566_s3 + $0x90] sm:$0xff] }
  0x34   :  { %v1960_v39 = vld [vmem:[#allocation3 + $0xa4] ss:$24 sps:$4 sm:$0xff]   ;;  %v1962_v43 = vld [vmem:[#allocation3 + $0x210] ss:$24 sps:$4 sm:$0xff]  }
  0x35   :  { %v1357_v46 = vld [vmem:[%s2566_s3 + $0x98] sm:$0xff]  ;;  %v1358_v49 = vld [vmem:[%s2566_s3 + $0xa0] sm:$0xff] }
  0x36   :  { %250 = vperm.xlu1 %1891, %v164_v51   ;;  %v174_v48 = vld [vmem:[%s2565_s2 + $0xb8] sm:$0xff] }
  0x37   :  { %880 = vmatmul.mubr.bf16.gmra.mrb[12].mxu1 %v1914_v42  ;;  %255 = vperm.xlu0 %1890, %v165_v54   ;;  %v173_v42 = vld [vmem:[%s2565_s2 + $0xb0] sm:$0xff]  ;;  %v1968_v51 = vld [vmem:[#allocation3 + $0x240] ss:$24 sps:$4 sm:$0xff]   ;;  %v1359_v54 = vld [vmem:[%s2566_s3 + $0xa8] sm:$0xff] }
  0x38   :  { %1041 = vmatmul.mubr.bf16.gmra.mrb[12].mxu0 %v1915_v44  ;;  %887 = vmatprep.mubr.bf16.mxu1 %v1916_v45  ;;  %v1963_v44 = vld [vmem:[#allocation3 + $0xa0] ss:$24 sps:$4 sm:$0xff]   ;;  %v1964_v45 = vld [vmem:[#allocation3 + $0x244] ss:$24 sps:$4 sm:$0xff]  }
  0x39   :  { %1048 = vmatprep.mubr.bf16.mxu0 %v1918_v47  ;;  %v1966_v47 = vld [vmem:[#allocation3 + $0xd4] ss:$24 sps:$4 sm:$0xff]  }
  0x3a   :  { %260 = vperm.xlu1 %1891, %v166_v56   ;;  %v176_v56 = vld [vmem:[%s2565_s2 + $0xc8] sm:$0xff] }
  0x3b   :  { %265 = vperm.xlu0 %1890, %v167_v57   ;;  %v1360_v57 = vld [vmem:[%s2566_s3 + $0xb0] sm:$0xff] }
  0x3e   :  { %270 = vperm.xlu1 %1891, %v168_v59   ;;  %v1974_v59 = vld [vmem:[#allocation3 + $0x270] ss:$24 sps:$4 sm:$0xff]  }
  0x3f   :  { %888 = vmatmul.mubr.bf16.gmra.mrb[16].mxu1 %v1920_v50  ;;  %275 = vperm.xlu0 %1890, %v169_v62   ;;  %v175_v50 = vld [vmem:[%s2565_s2 + $0xc0] sm:$0xff]  ;;  %v1361_v62 = vld [vmem:[%s2566_s3 + $0xb8] sm:$0xff] }
  0x40   :  { %1049 = vmatmul.mubr.bf16.gmra.mrb[16].mxu0 %v1921_v52  ;;  %895 = vmatprep.mubr.bf16.mxu1 %v1922_v53  ;;  %v1969_v52 = vld [vmem:[#allocation3 + $0xd0] ss:$24 sps:$4 sm:$0xff]   ;;  %v1970_v53 = vld [vmem:[#allocation3 + $0x274] ss:$24 sps:$4 sm:$0xff]  }
  0x41   :  { %1056 = vmatprep.mubr.bf16.mxu0 %v1924_v55  ;;  %v1972_v55 = vld [vmem:[#allocation3 + $0x104] ss:$24 sps:$4 sm:$0xff]  }
  0x42   :  { %280 = vperm.xlu1 %1891, %v170_v0   ;;  %v178_v0 = vld [vmem:[%s2565_s2 + $0xd8] sm:$0xff] }
  0x43   :  { %285 = vperm.xlu0 %1890, %v171_v1   ;;  %v1362_v1 = vld [vmem:[%s2566_s3 + $0xc0] sm:$0xff] }
  0x46   :  { %290 = vperm.xlu1 %1891, %v172_v3   ;;  %v1980_v3 = vld [vmem:[#allocation3 + $0x2a0] ss:$24 sps:$4 sm:$0xff]  }
  0x47   :  { %896 = vmatmul.mubr.bf16.gmra.mrb[20].mxu1 %v1926_v58  ;;  %1372 = vperm.xlu0 %1890, %v1338_v6   ;;  %v177_v58 = vld [vmem:[%s2565_s2 + $0xd0] sm:$0xff]  ;;  %v1363_v6 = vld [vmem:[%s2566_s3 + $0xc8] sm:$0xff] }
  0x48   :  { %1057 = vmatmul.mubr.bf16.gmra.mrb[20].mxu0 %v1927_v60  ;;  %903 = vmatprep.mubr.bf16.mxu1 %v1928_v61  ;;  %v1975_v60 = vld [vmem:[#allocation3 + $0x100] ss:$24 sps:$4 sm:$0xff]   ;;  %v1976_v61 = vld [vmem:[#allocation3 + $0x2a4] ss:$24 sps:$4 sm:$0xff]  }
  0x49   :  { %1064 = vmatprep.mubr.bf16.mxu0 %v1930_v63  ;;  %v1978_v63 = vld [vmem:[#allocation3 + $0x134] ss:$24 sps:$4 sm:$0xff]  }
  0x4a   :  { %1377 = vperm.xlu1 %1891, %v1339_v8   ;;  %v180_v8 = vld [vmem:[%s2565_s2 + $0xe8] sm:$0xff] }
  0x4b   :  { %1382 = vperm.xlu0 %1890, %v1340_v9   ;;  %v1364_v9 = vld [vmem:[%s2566_s3 + $0xd0] sm:$0xff] }
  0x4e   :  { %1387 = vperm.xlu1 %1891, %v1341_v10   ;;  %v181_v10 = vld [vmem:[%s2565_s2 + $0xf0] sm:$0xff] }
  0x4f   :  { %904 = vmatmul.mubr.bf16.gmra.mrb[24].mxu1 %v1932_v2  ;;  %1392 = vperm.xlu0 %1890, %v1342_v14   ;;  %v179_v2 = vld [vmem:[%s2565_s2 + $0xe0] sm:$0xff]  ;;  %v1365_v14 = vld [vmem:[%s2566_s3 + $0xd8] sm:$0xff] }
  0x50   :  { %1065 = vmatmul.mubr.bf16.gmra.mrb[24].mxu0 %v1933_v4  ;;  %911 = vmatprep.mubr.bf16.mxu1 %v1934_v5  ;;  %v1981_v4 = vld [vmem:[#allocation3 + $0x130] ss:$24 sps:$4 sm:$0xff]   ;;  %v1982_v5 = vld [vmem:[#allocation3 + $0x2d4] ss:$24 sps:$4 sm:$0xff]  }
  0x51   :  { %1072 = vmatprep.mubr.bf16.mxu0 %v1936_v7  ;;  %v1984_v7 = vld [vmem:[#allocation3 + $0x164] ss:$24 sps:$4 sm:$0xff]  }
  0x52   :  { %1397 = vperm.xlu1 %1891, %v1343_v16   ;;  %v182_v16 = vld [vmem:[%s2565_s2 + $0xf8] sm:$0xff] }
  0x53   :  { %1402 = vperm.xlu0 %1890, %v1344_v17   ;;  %v1366_v17 = vld [vmem:[%s2566_s3 + $0xe0] sm:$0xff] }
  0x56   :  { %1407 = vperm.xlu1 %1891, %v1345_v19   ;;  %v1988_v19 = vld [vmem:[#allocation3 + $0x188] ss:$24 sps:$4 sm:$0xff]  }
  0x57   :  { %912 = vmatmul.mubr.bf16.gmra.mrb[28].mxu1 %v1938_v11  ;;  %1412 = vperm.xlu0 %1890, %v1346_v22   ;;  %v1986_v11 = vld [vmem:[#allocation3 + $0x2d0] ss:$24 sps:$4 sm:$0xff]  }
  0x58   :  { %1073 = vmatmul.mubr.bf16.gmra.mrb[28].mxu0 %v1939_v12  ;;  %919 = vmatprep.mubr.bf16.mxu1 %v1940_v13  ;;  %v1987_v12 = vld [vmem:[#allocation3 + $0x160] ss:$24 sps:$4 sm:$0xff]   ;;  %v1990_v13 = vld [vmem:[#allocation3 + $0x18c] ss:$24 sps:$4 sm:$0xff]   ;;  %v1368_v22 = vld [vmem:[%s2566_s3 + $0xf0] sm:$0xff] }
  0x59   :  { %1177 = vmatprep.mubr.bf16.mxu0 %v1944_v15  ;;  %v1991_v15 = vld [vmem:[#allocation3 + $0x194] ss:$24 sps:$4 sm:$0xff]  }
  0x5a   :  { %1417 = vperm.xlu1 %1891, %v1347_v24   ;;  %v1369_v24 = vld [vmem:[%s2566_s3 + $0xf8] sm:$0xff] }
  0x5b   :  { %1422 = vperm.xlu0 %1890, %v1348_v25   ;;  %v1998_v25 = vld [vmem:[#allocation3 + $0x1b8] ss:$24 sps:$4 sm:$0xff]  }
  0x5e   :  { %1427 = vperm.xlu1 %1891, %v1349_v27   ;;  %v2000_v27 = vld [vmem:[#allocation3 + $0x1ec] ss:$24 sps:$4 sm:$0xff]  }
  0x5f   :  { %920 = vmatmul.mubr.bf16.gmra.mrb[32].mxu1 %v1945_v20  ;;  %1432 = vperm.xlu0 %1890, %v1350_v30   ;;  %v1993_v20 = vld [vmem:[#allocation3 + $0x190] ss:$24 sps:$4 sm:$0xff]  }
  0x60   :  { %1178 = vmatmul.mubr.bf16.vlgmr.msra.gmra.mrb[0].mxu0 %v1942_v18  ;;  %927 = vmatprep.mubr.bf16.mxu1 %v1946_v21  ;;  %v1367_v18 = vld [vmem:[%s2566_s3 + $0xe8] sm:$0xff]  ;;  %v1994_v21 = vld [vmem:[#allocation3 + $0x1bc] ss:$24 sps:$4 sm:$0xff]  }
  0x61   :  { %1185 = vmatprep.mubr.bf16.mxu0 %v1948_v23  ;;  %v1996_v23 = vld [vmem:[#allocation3 + $0x1c4] ss:$24 sps:$4 sm:$0xff]   ;;  %v2005_v30 = vld [vmem:[#allocation3 + $0x1f0] ss:$24 sps:$4 sm:$0xff]  }
  0x62   :  { %1437 = vperm.xlu1 %1891, %v1351_v32   ;;  %v2008_v32 = vld [vmem:[#allocation3 + $0x224] ss:$24 sps:$4 sm:$0xff]  }
  0x63   :  { %1442 = vperm.xlu0 %1890, %v1352_v33   ;;  %v2010_v33 = vld [vmem:[#allocation3 + $0x218] ss:$24 sps:$4 sm:$0xff]  }
  0x66   :  { %1447 = vperm.xlu1 %1891, %v1353_v35   ;;  %v2012_v35 = vld [vmem:[#allocation3 + $0x24c] ss:$24 sps:$4 sm:$0xff]  }
  0x67   :  { %928 = vmatmul.mubr.bf16.gmra.mrb[36].mxu1 %v1950_v26  ;;  %1452 = vperm.xlu0 %1890, %v1354_v38   ;;  %v1999_v26 = vld [vmem:[#allocation3 + $0x1c0] ss:$24 sps:$4 sm:$0xff]   ;;  %v2017_v38 = vld [vmem:[#allocation3 + $0x250] ss:$24 sps:$4 sm:$0xff]  }
  0x68   :  { %1186 = vmatmul.mubr.bf16.gmra.mrb[4].mxu0 %v1951_v28  ;;  %935 = vmatprep.mubr.bf16.mxu1 %v1952_v29  ;;  %v2002_v28 = vld [vmem:[#allocation3 + $0x1f4] ss:$24 sps:$4 sm:$0xff]   ;;  %v2004_v29 = vld [vmem:[#allocation3 + $0x1e8] ss:$24 sps:$4 sm:$0xff]  }
  0x69   :  { %1193 = vmatprep.mubr.bf16.mxu0 %v1954_v31  ;;  %v2006_v31 = vld [vmem:[#allocation3 + $0x21c] ss:$24 sps:$4 sm:$0xff]  }
  0x6a   :  { %1457 = vperm.xlu1 %1891, %v1355_v40   ;;  %v2020_v40 = vld [vmem:[#allocation3 + $0x284] ss:$24 sps:$4 sm:$0xff]  }
  0x6b   :  { %1462 = vperm.xlu0 %1890, %v1356_v41   ;;  %v2022_v41 = vld [vmem:[#allocation3 + $0x278] ss:$24 sps:$4 sm:$0xff]  }
  0x6e   :  { %295 = vperm.xlu1 %1891, %v173_v42   ;;  %v2023_v42 = vld [vmem:[#allocation3 + $0x280] ss:$24 sps:$4 sm:$0xff]  }
  0x6f   :  { %936 = vmatmul.mubr.bf16.gmra.mrb[40].mxu1 %v1956_v34  ;;  %1467 = vperm.xlu0 %1890, %v1357_v46   ;;  %v2011_v34 = vld [vmem:[#allocation3 + $0x220] ss:$24 sps:$4 sm:$0xff]   ;;  %v2029_v46 = vld [vmem:[#allocation3 + $0x2b0] ss:$24 sps:$4 sm:$0xff]  }
  0x70   :  { %1194 = vmatmul.mubr.bf16.gmra.mrb[8].mxu0 %v1957_v36  ;;  %943 = vmatprep.mubr.bf16.mxu1 %v1958_v37  ;;  %v2014_v36 = vld [vmem:[#allocation3 + $0x254] ss:$24 sps:$4 sm:$0xff]   ;;  %v2016_v37 = vld [vmem:[#allocation3 + $0x248] ss:$24 sps:$4 sm:$0xff]  }
  0x71   :  { %1201 = vmatprep.mubr.bf16.mxu0 %v1960_v39  ;;  %v2018_v39 = vld [vmem:[#allocation3 + $0x27c] ss:$24 sps:$4 sm:$0xff]  }
  0x72   :  { %300 = vperm.xlu1 %1891, %v174_v48   ;;  %v2032_v48 = vld [vmem:[#allocation3 + $0x2e4] ss:$24 sps:$4 sm:$0xff]  }
  0x73   :  { %1472 = vperm.xlu0 %1890, %v1358_v49   ;;  %v2034_v49 = vld [vmem:[#allocation3 + $0x2d8] ss:$24 sps:$4 sm:$0xff]  }
  0x76   :  { %305 = vperm.xlu1 %1891, %v175_v50   ;;  %v2035_v50 = vld [vmem:[#allocation3 + $0x2e0] ss:$24 sps:$4 sm:$0xff]  }
  0x77   :  { %944 = vmatmul.mubr.bf16.gmra.mrb[44].mxu1 %v1962_v43  ;;  %1477 = vperm.xlu0 %1890, %v1359_v54   ;;  %v2024_v43 = vld [vmem:[#allocation3 + $0x2ac] ss:$24 sps:$4 sm:$0xff]  }
  0x78   :  { %1202 = vmatmul.mubr.bf16.gmra.mrb[12].mxu0 %v1963_v44  ;;  %951 = vmatprep.mubr.bf16.mxu1 %v1964_v45  ;;  %v2026_v44 = vld [vmem:[#allocation3 + $0x2b4] ss:$24 sps:$4 sm:$0xff]   ;;  %v2028_v45 = vld [vmem:[#allocation3 + $0x2a8] ss:$24 sps:$4 sm:$0xff]  }
  0x79   :  { %1209 = vmatprep.mubr.bf16.mxu0 %v1966_v47  ;;  %v2030_v47 = vld [vmem:[#allocation3 + $0x2dc] ss:$24 sps:$4 sm:$0xff]  }
  0x7a   :  { %310 = vperm.xlu1 %1891, %v176_v56  }
  0x7b   :  { %1482 = vperm.xlu0 %1890, %v1360_v57  }
  0x7e   :  { %315 = vperm.xlu1 %1891, %v177_v58  }
  0x7f   :  { %952 = vmatmul.mubr.bf16.gmra.mrb[48].mxu1 %v1968_v51  ;;  %1487 = vperm.xlu0 %1890, %v1361_v62  }
  0x80   :  { %1210 = vmatmul.mubr.bf16.gmra.mrb[16].mxu0 %v1969_v52  ;;  %959 = vmatprep.mubr.bf16.mxu1 %v1970_v53 }
  0x81   :  { %1217 = vmatprep.mubr.bf16.mxu0 %v1972_v55 }
  0x82   :  { %320 = vperm.xlu1 %1891, %v178_v0  }
  0x83   :  { %1492 = vperm.xlu0 %1890, %v1362_v1  }
  0x86   :  { %325 = vperm.xlu1 %1891, %v179_v2  }
  0x87   :  { %960 = vmatmul.mubr.bf16.gmra.mrb[52].mxu1 %v1974_v59  ;;  %1497 = vperm.xlu0 %1890, %v1363_v6  }
  0x88   :  { %1218 = vmatmul.mubr.bf16.gmra.mrb[20].mxu0 %v1975_v60  ;;  %967 = vmatprep.mubr.bf16.mxu1 %v1976_v61 }
  0x89   :  { %1225 = vmatprep.mubr.bf16.mxu0 %v1978_v63 }
  0x8a   :  { %330 = vperm.xlu1 %1891, %v180_v8  }
  0x8b   :  { %1502 = vperm.xlu0 %1890, %v1364_v9  }
  0x8e   :  { %335 = vperm.xlu1 %1891, %v181_v10  }
  0x8f   :  { %968 = vmatmul.mubr.bf16.gmra.mrb[56].mxu1 %v1980_v3  ;;  %1507 = vperm.xlu0 %1890, %v1365_v14  }
  0x90   :  { %1226 = vmatmul.mubr.bf16.gmra.mrb[24].mxu0 %v1981_v4  ;;  %975 = vmatprep.mubr.bf16.mxu1 %v1982_v5 }
  0x91   :  { %1233 = vmatprep.mubr.bf16.mxu0 %v1984_v7 }
  0x92   :  { %340 = vperm.xlu1 %1891, %v182_v16  }
  0x93   :  { %1512 = vperm.xlu0 %1890, %v1366_v17  }
  0x96   :  { %1517 = vperm.xlu1 %1891, %v1367_v18  }
  0x97   :  { %976 = vmatmul.mubr.bf16.gmra.mrb[60].mxu1 %v1986_v11  ;;  %1522 = vperm.xlu0 %1890, %v1368_v22  }
  0x98   :  { %1234 = vmatmul.mubr.bf16.gmra.mrb[28].mxu0 %v1987_v12  ;;  %1080 = vmatprep.mubr.bf16.mxu1 %v1990_v13 }
  0x99   :  { %1241 = vmatprep.mubr.bf16.mxu0 %v1991_v15 }
  0x9a   :  { %1527 = vperm.xlu1 %1891, %v1369_v24   ;;  %v186_v51 = vpop.permute.xlu0 %185  ;;  %v2363_v52 = vpop.permute.xlu1 %195 }
  0x9e   :  { %v191_v53 = vpop.permute.xlu0 %190 }
  0x9f   :  { %1081 = vmatmul.mubr.bf16.vlgmr.msra.gmra.mrb[32].mxu1 %v1988_v19 }
  0xa0   :  { %1242 = vmatmul.mubr.bf16.gmra.mrb[32].mxu0 %v1993_v20  ;;  %1088 = vmatprep.mubr.bf16.mxu1 %v1994_v21 }
  0xa1   :  { %1249 = vmatprep.mubr.bf16.mxu0 %v1996_v23  ;;  %v2365_v54 = vpop.permute.xlu1 %200 }
  0xa2   :  { %v2367_v56 = vpop.permute.xlu0 %205 }
  0xa5   :  { %v2369_v58 = vpop.permute.xlu1 %210 }
  0xa6   :  { %v2371_v61 = vpop.permute.xlu0 %215 }
  0xa7   :  { %1089 = vmatmul.mubr.bf16.gmra.mrb[36].mxu1 %v1998_v25 }
  0xa8   :  { %1250 = vmatmul.mubr.bf16.gmra.mrb[36].mxu0 %v1999_v26  ;;  %1096 = vmatprep.mubr.bf16.mxu1 %v2000_v27 }
  0xa9   :  { %1257 = vmatprep.mubr.bf16.mxu0 %v2002_v28  ;;  %v2373_v62 = vpop.permute.xlu1 %220 }
  0xaa   :  { %v2377_v3 = vpop.permute.xlu0 %225 }
  0xad   :  { %v2379_v4 = vpop.permute.xlu1 %230 }
  0xae   :  { %v2385_v8 = vpop.permute.xlu0 %235 }
  0xaf   :  { %1097 = vmatmul.mubr.bf16.gmra.mrb[40].mxu1 %v2004_v29 }
  0xb0   :  { %1258 = vmatmul.mubr.bf16.gmra.mrb[40].mxu0 %v2005_v30  ;;  %1104 = vmatprep.mubr.bf16.mxu1 %v2006_v31 }
  0xb1   :  { %1265 = vmatprep.mubr.bf16.mxu0 %v2008_v32  ;;  %v2387_v10 = vpop.permute.xlu1 %240 }
  0xb2   :  { %v2391_v12 = vpop.permute.xlu0 %245 }
  0xb5   :  { %v2393_v14 = vpop.permute.xlu1 %250 }
  0xb6   :  { %v2397_v17 = vpop.permute.xlu0 %255 }
  0xb7   :  { %1105 = vmatmul.mubr.bf16.gmra.mrb[44].mxu1 %v2010_v33 }
  0xb8   :  { %1266 = vmatmul.mubr.bf16.gmra.mrb[44].mxu0 %v2011_v34  ;;  %1112 = vmatprep.mubr.bf16.mxu1 %v2012_v35 }
  0xb9   :  { %1273 = vmatprep.mubr.bf16.mxu0 %v2014_v36  ;;  %v2399_v18 = vpop.permute.xlu1 %260 }
  0xba   :  { %v2405_v23 = vpop.permute.xlu0 %265 }
  0xbd   :  { %v2407_v24 = vpop.permute.xlu1 %270 }
  0xbe   :  { %v2413_v28 = vpop.permute.xlu0 %275 }
  0xbf   :  { %1113 = vmatmul.mubr.bf16.gmra.mrb[48].mxu1 %v2016_v37 }
  0xc0   :  { %1274 = vmatmul.mubr.bf16.gmra.mrb[48].mxu0 %v2017_v38  ;;  %1120 = vmatprep.mubr.bf16.mxu1 %v2018_v39 }
  0xc1   :  { %1281 = vmatprep.mubr.bf16.mxu0 %v2020_v40  ;;  %v2415_v30 = vpop.permute.xlu1 %280 }
  0xc2   :  { %v2419_v32 = vpop.permute.xlu0 %285 }
  0xc5   :  { %v2421_v34 = vpop.permute.xlu1 %290 }
  0xc6   :  { %v1373_v37 = vpop.permute.xlu0 %1372 }
  0xc7   :  { %1121 = vmatmul.mubr.bf16.gmra.mrb[52].mxu1 %v2022_v41 }
  0xc8   :  { %1282 = vmatmul.mubr.bf16.gmra.mrb[52].mxu0 %v2023_v42  ;;  %1128 = vmatprep.mubr.bf16.mxu1 %v2024_v43 }
  0xc9   :  { %1289 = vmatprep.mubr.bf16.mxu0 %v2026_v44  ;;  %v1378_v38 = vpop.permute.xlu1 %1377 }
  0xca   :  { %v1383_v43 = vpop.permute.xlu0 %1382 }
  0xcd   :  { %v1388_v44 = vpop.permute.xlu1 %1387 }
  0xcf   :  { %1129 = vmatmul.mubr.bf16.gmra.mrb[56].mxu1 %v2028_v45 }
  0xd0   :  { %1290 = vmatmul.mubr.bf16.gmra.mrb[56].mxu0 %v2029_v46  ;;  %1136 = vmatprep.mubr.bf16.mxu1 %v2030_v47 }
  0xd1   :  { %1297 = vmatprep.mubr.bf16.mxu0 %v2032_v48 }
  0xd7   :  { %1137 = vmatmul.mubr.bf16.gmra.mrb[60].mxu1 %v2034_v49 }
  0xd8   :  { %1298 = vmatmul.mubr.bf16.gmra.mrb[60].mxu0 %v2035_v50  ;;  %v1393_v50 = vpop.permute.xlu0 %1392 }
  0xf2   :  { %v857_v55 = vpop.f32.mrb[0].mxu1 }
  0xf3   :  { %v859_v57 = vpop.f32.mrb[1].mxu1  ;;  %v858_v45 = vadd.f32 %v857_v55, %v186_v51 }
  0xf4   :  { %v860_v59 = vpop.f32.mrb[2].mxu1 }
  0xf5   :  { %v862_v60 = vpop.f32.mrb[3].mxu1  ;;  %v861_v47 = vadd.f32 %v860_v59, %v191_v53 }
  0xf6   :  { %v1398_v60 = vpop.permute.xlu1 %1397 }
  0xfa   :  { %v865_v63 = vpop.f32.mrb[4].mxu1 }
  0xfb   :  { %v867_v0 = vpop.f32.mrb[5].mxu1 }
  0xfc   :  { %v2375_v1 = vpop.f32.mrb[6].mxu1 }
  0xfd   :  { %v870_v2 = vpop.f32.mrb[7].mxu1  ;;  %v869_v51 = vadd.f32 %v2375_v1, %v2365_v54 }
 0x102   :  { %v2381_v5 = vpop.f32.mrb[8].mxu1 }
 0x103   :  { %v875_v6 = vpop.f32.mrb[9].mxu1 }
 0x104   :  { %v2383_v7 = vpop.f32.mrb[10].mxu1 }
 0x105   :  { %v878_v9 = vpop.f32.mrb[11].mxu1 }
 0x10a   :  { %v2389_v11 = vpop.f32.mrb[12].mxu1 }
 0x10b   :  { %v883_v13 = vpop.f32.mrb[13].mxu1 }
 0x10c   :  { %v2395_v15 = vpop.f32.mrb[14].mxu1 }
 0x10d   :  { %v886_v16 = vpop.f32.mrb[15].mxu1 }
 0x10e   :  { %v866_v16 = vadd.f32 %v865_v63, %v2363_v52 }
 0x112   :  { %v2401_v19 = vpop.f32.mrb[16].mxu1 }
 0x113   :  { %v891_v20 = vpop.f32.mrb[17].mxu1 }
 0x114   :  { %v2403_v21 = vpop.f32.mrb[18].mxu1 }
 0x115   :  { %v894_v22 = vpop.f32.mrb[19].mxu1 }
 0x116   :  { %v1403_v22 = vpop.permute.xlu0 %1402 }
 0x11a   :  { %v2409_v25 = vpop.f32.mrb[20].mxu1  ;;  %v1413_v63 = vpop.permute.xlu0 %1412 }
 0x11b   :  { %v899_v26 = vpop.f32.mrb[21].mxu1 }
 0x11c   :  { %v2411_v27 = vpop.f32.mrb[22].mxu1 }
 0x11d   :  { %v902_v29 = vpop.f32.mrb[23].mxu1 }
 0x11e   :  { %v1408_v29 = vpop.permute.xlu1 %1407 }
 0x122   :  { %v2417_v31 = vpop.f32.mrb[24].mxu1 }
 0x123   :  { %v907_v33 = vpop.f32.mrb[25].mxu1 }
 0x124   :  { %v2423_v35 = vpop.f32.mrb[26].mxu1 }
 0x125   :  { %v910_v36 = vpop.f32.mrb[27].mxu1 }
 0x12a   :  { %v2425_v39 = vpop.f32.mrb[28].mxu1 }
 0x12b   :  { %v915_v40 = vpop.f32.mrb[29].mxu1 }
 0x12c   :  { %v2427_v41 = vpop.f32.mrb[30].mxu1 }
 0x12d   :  { %v918_v42 = vpop.f32.mrb[31].mxu1 }
 0x133   :  { %v1179_v46 = vpop.f32.mrb[0].mxu0 }
 0x134   :  { %v1758_v48 = vadd.f32 %v1179_v46, %v858_v45  ;;  %v1181_v49 = vpop.f32.mrb[1].mxu0 }
 0x135   :  { %v1182_v57 = vpop.f32.mrb[2].mxu0 }
 0x136   :  { %v1306_v0 = vmax.f32 %v1758_v48, 0.0  ;;  %v1760_v2 = vadd.f32 %v1182_v57, %v861_v47  ;;  %v1184_v6 = vpop.f32.mrb[3].mxu0  ;;  %v874_v47 = vadd.f32 %v2381_v5, %v2367_v56  ;;  %v877_v57 = vadd.f32 %v2383_v7, %v2369_v58 }
 0x138   :  { %v1530_v9 = vmul.f32 %v1373_v37, %v1306_v0  ;;  %v1307_v13 = vmax.f32 %v1760_v2, 0.0 }
 0x13a   :  { %v1531_v20 = vmul.f32 %v1378_v38, %v1307_v13  ;;  %v1563_v53 = vsel %vm1562_vm0, %v1530_v9, 0.0  ;;  %v1418_v38 = vpop.permute.xlu1 %1417 }
 0x13b   :  { %v1187_v26 = vpop.f32.mrb[4].mxu0 }
 0x13c   :  { %v1564_v55 = vsel %vm1562_vm0, %v1531_v20, 0.0  ;;  %v1762_v59 = vadd.f32 %v1187_v26, %v866_v16  ;;  %v1189_v33 = vpop.f32.mrb[5].mxu0  ;;  %v1423_v26 = vpop.permute.xlu0 %1422 }
 0x13d   :  { %v1565_v36 = vadd.f32 %v1564_v55, %v1563_v53  ;;  %v1190_v40 = vpop.f32.mrb[6].mxu0 }
 0x13e   :  { %v1308_v37 = vmax.f32 %v1762_v59, 0.0  ;;  %v1764_v42 = vadd.f32 %v1190_v40, %v869_v51  ;;  %v1192_v45 = vpop.f32.mrb[7].mxu0  ;;  %v1428_v51 = vpop.permute.xlu1 %1427  ;;  %v885_v59 = vadd.f32 %v2395_v15, %v2373_v62 }
 0x140   :  { %v1532_v46 = vmul.f32 %v1383_v43, %v1308_v37  ;;  %v1309_v52 = vmax.f32 %v1764_v42, 0.0  ;;  %v2446_v37 = vpop.permute.xlu0 %1432 }
 0x142   :  { %v1566_v54 = vsel %vm1562_vm0, %v1532_v46, 0.0  ;;  %v1533_v1 = vmul.f32 %v1388_v44, %v1309_v52  ;;  %v882_v44 = vadd.f32 %v2389_v11, %v2371_v61  ;;  %v2448_v45 = vpop.permute.xlu1 %1437 }
 0x143   :  { %v1567_v48 = vadd.f32 %v1566_v54, %v1565_v36  ;;  %v1195_v49 = vpop.f32.mrb[8].mxu0 }
 0x144   :  { %v1568_v0 = vsel %vm1562_vm0, %v1533_v1, 0.0  ;;  %v1766_v2 = vadd.f32 %v1195_v49, %v874_v47  ;;  %v1197_v6 = vpop.f32.mrb[9].mxu0  ;;  %v890_v47 = vadd.f32 %v2401_v19, %v2377_v3  ;;  %v2453_v54 = vpop.permute.xlu0 %1442 }
 0x145   :  { %v1569_v9 = vadd.f32 %v1568_v0, %v1567_v48  ;;  %v1198_v43 = vpop.f32.mrb[10].mxu0 }
 0x146   :  { %v1310_v13 = vmax.f32 %v1766_v2, 0.0  ;;  %v1768_v16 = vadd.f32 %v1198_v43, %v877_v57  ;;  %v1200_v20 = vpop.f32.mrb[11].mxu0  ;;  %v2455_v49 = vpop.permute.xlu1 %1447  ;;  %v893_v57 = vadd.f32 %v2403_v21, %v2379_v4 }
 0x148   :  { %v1534_v56 = vmul.f32 %v1393_v50, %v1310_v13  ;;  %v1311_v5 = vmax.f32 %v1768_v16, 0.0  ;;  %v2460_v16 = vpop.permute.xlu0 %1452 }
 0x14a   :  { %v1570_v53 = vsel %vm1562_vm0, %v1534_v56, 0.0  ;;  %v1535_v55 = vmul.f32 %v1398_v60, %v1311_v5  ;;  %v2462_v20 = vpop.permute.xlu1 %1457  ;;  %v898_v56 = vadd.f32 %v2409_v25, %v2385_v8 }
 0x14b   :  { %v1571_v58 = vadd.f32 %v1570_v53, %v1569_v9  ;;  %v1203_v7 = vpop.f32.mrb[12].mxu0  ;;  %v901_v53 = vadd.f32 %v2411_v27, %v2387_v10 }
 0x14c   :  { %v1572_v33 = vsel %vm1562_vm0, %v1535_v55, 0.0  ;;  %v1770_v36 = vadd.f32 %v1203_v7, %v882_v44  ;;  %v1205_v40 = vpop.f32.mrb[13].mxu0 }
 0x14d   :  { %v1573_v42 = vadd.f32 %v1572_v33, %v1571_v58  ;;  %v1206_v50 = vpop.f32.mrb[14].mxu0 }
 0x14e   :  { %v1312_v46 = vmax.f32 %v1770_v36, 0.0  ;;  %v1772_v61 = vadd.f32 %v1206_v50, %v885_v59  ;;  %v1208_v11 = vpop.f32.mrb[15].mxu0  ;;  %v2472_v8 = vpop.permute.xlu1 %295  ;;  %v906_v50 = vadd.f32 %v2417_v31, %v2391_v12 }
 0x14f   :  { %v909_v11 = vadd.f32 %v2423_v35, %v2393_v14 }
 0x150   :  { %v1536_v52 = vmul.f32 %v1403_v22, %v1312_v46  ;;  %v1313_v60 = vmax.f32 %v1772_v61, 0.0 }
 0x152   :  { %v1574_v62 = vsel %vm1562_vm0, %v1536_v52, 0.0  ;;  %v1537_v15 = vmul.f32 %v1408_v29, %v1313_v60 }
 0x153   :  { %v1575_v1 = vadd.f32 %v1574_v62, %v1573_v42  ;;  %v1211_v48 = vpop.f32.mrb[16].mxu0  ;;  %v2470_v42 = vpop.permute.xlu0 %1462 }
 0x154   :  { %v1576_v0 = vsel %vm1562_vm0, %v1537_v15, 0.0  ;;  %v1774_v2 = vadd.f32 %v1211_v48, %v890_v47  ;;  %v1213_v22 = vpop.f32.mrb[17].mxu0 }
 0x155   :  { %v1577_v6 = vadd.f32 %v1576_v0, %v1575_v1  ;;  %v1214_v9 = vpop.f32.mrb[18].mxu0  ;;  %v2482_v1 = vpop.permute.xlu1 %300  ;;  %v914_v0 = vadd.f32 %v2425_v39, %v2397_v17 }
 0x156   :  { %v1314_v43 = vmax.f32 %v1774_v2, 0.0  ;;  %v1776_v3 = vadd.f32 %v1214_v9, %v893_v57  ;;  %v1216_v19 = vpop.f32.mrb[19].mxu0 }
 0x157   :  { %v2480_v62 = vpop.permute.xlu0 %1467 }
 0x158   :  { %v1538_v13 = vmul.f32 %v1413_v63, %v1314_v43  ;;  %v1315_v29 = vmax.f32 %v1776_v3, 0.0  ;;  %v917_v43 = vadd.f32 %v2427_v41, %v2399_v18 }
 0x159   :  { %v2491_v9 = vpop.permute.xlu1 %305 }
 0x15a   :  { %v1578_v4 = vsel %vm1562_vm0, %v1538_v13, 0.0  ;;  %v1539_v21 = vmul.f32 %v1418_v38, %v1315_v29 }
 0x15b   :  { %v1579_v5 = vadd.f32 %v1578_v4, %v1577_v6  ;;  %v1219_v44 = vpop.f32.mrb[20].mxu0  ;;  %v2489_v2 = vpop.permute.xlu0 %1472 }
 0x15c   :  { %v1580_v55 = vsel %vm1562_vm0, %v1539_v21, 0.0  ;;  %v1778_v58 = vadd.f32 %v1219_v44, %v898_v56  ;;  %v1221_v63 = vpop.f32.mrb[21].mxu0 }
 0x15d   :  { %v1581_v7 = vadd.f32 %v1580_v55, %v1579_v5  ;;  %v1222_v59 = vpop.f32.mrb[22].mxu0  ;;  %v2499_v5 = vpop.permute.xlu1 %310 }
 0x15e   :  { %v1316_v33 = vmax.f32 %v1778_v58, 0.0  ;;  %v1780_v36 = vadd.f32 %v1222_v59, %v901_v53  ;;  %v1224_v40 = vpop.f32.mrb[23].mxu0 }
 0x15f   :  { %v2497_v21 = vpop.permute.xlu0 %1477 }
 0x160   :  { %v1540_v25 = vmul.f32 %v1423_v26, %v1316_v33  ;;  %v1317_v38 = vmax.f32 %v1780_v36, 0.0 }
 0x162   :  { %v1582_v10 = vsel %vm1562_vm0, %v1540_v25, 0.0  ;;  %v1541_v27 = vmul.f32 %v1428_v51, %v1317_v38 }
 0x163   :  { %v1583_v46 = vadd.f32 %v1582_v10, %v1581_v7  ;;  %v1227_v61 = vpop.f32.mrb[24].mxu0 }
 0x164   :  { %v1584_v52 = vsel %vm1562_vm0, %v1541_v27, 0.0  ;;  %v1782_v60 = vadd.f32 %v1227_v61, %v906_v50  ;;  %v1229_v47 = vpop.f32.mrb[25].mxu0  ;;  %v2509_v61 = vpop.permute.xlu1 %315 }
 0x165   :  { %v1585_v15 = vadd.f32 %v1584_v52, %v1583_v46  ;;  %v1230_v26 = vpop.f32.mrb[26].mxu0 }
 0x166   :  { %v1318_v48 = vmax.f32 %v1782_v60, 0.0  ;;  %v1784_v12 = vadd.f32 %v1230_v26, %v909_v11  ;;  %v1232_v31 = vpop.f32.mrb[27].mxu0 }
 0x168   :  { %v1542_v51 = vmul.f32 %v2446_v37, %v1318_v48  ;;  %v1319_v57 = vmax.f32 %v1784_v12, 0.0 }
 0x16a   :  { %v1586_v14 = vsel %vm1562_vm0, %v1542_v51, 0.0  ;;  %v1543_v35 = vmul.f32 %v2448_v45, %v1319_v57 }
 0x16b   :  { %v1587_v22 = vadd.f32 %v1586_v14, %v1585_v15  ;;  %v1235_v6 = vpop.f32.mrb[28].mxu0 }
 0x16c   :  { %v1588_v3 = vsel %vm1562_vm0, %v1543_v35, 0.0  ;;  %v1786_v37 = vadd.f32 %v1235_v6, %v914_v0  ;;  %v1237_v19 = vpop.f32.mrb[29].mxu0 }
 0x16d   :  { %v1589_v13 = vadd.f32 %v1588_v3, %v1587_v22  ;;  %v1238_v29 = vpop.f32.mrb[30].mxu0  ;;  %v2517_v3 = vpop.permute.xlu1 %320 }
 0x16e   :  { %v1320_v17 = vmax.f32 %v1786_v37, 0.0  ;;  %v1788_v39 = vadd.f32 %v1238_v29, %v917_v43  ;;  %v1240_v56 = vpop.f32.mrb[31].mxu0 }
 0x170   :  { %v1544_v45 = vmul.f32 %v2453_v54, %v1320_v17  ;;  %v1321_v4 = vmax.f32 %v1788_v39, 0.0 }
 0x172   :  { %v1590_v44 = vsel %vm1562_vm0, %v1544_v45, 0.0  ;;  %v1545_v18 = vmul.f32 %v2455_v49, %v1321_v4  ;;  %v1082_v41 = vpop.f32.mrb[32].mxu1  ;;  %v2506_v49 = vpop.permute.xlu0 %1482 }
 0x173   :  { %v1591_v53 = vadd.f32 %v1590_v44, %v1589_v13  ;;  %v1789_v55 = vadd.f32 %v1082_v41, %v2405_v23  ;;  %v1243_v58 = vpop.f32.mrb[32].mxu0  ;;  %v1084_v63 = vpop.f32.mrb[33].mxu1 }
 0x174   :  { %v1592_v7 = vsel %vm1562_vm0, %v1545_v18, 0.0  ;;  %v1245_v59 = vpop.f32.mrb[33].mxu0  ;;  %v1085_v33 = vpop.f32.mrb[34].mxu1 }
 0x175   :  { %v1593_v54 = vadd.f32 %v1592_v7, %v1591_v53  ;;  %v1790_v36 = vadd.f32 %v1789_v55, %v1243_v58  ;;  %v1791_v40 = vadd.f32 %v1085_v33, %v2407_v24  ;;  %v1246_v25 = vpop.f32.mrb[34].mxu0  ;;  %v1087_v38 = vpop.f32.mrb[35].mxu1 }
 0x176   :  { %v1248_v50 = vpop.f32.mrb[35].mxu0  ;;  %v1488_v43 = vpop.permute.xlu0 %1487 }
 0x177   :  { %v1322_v10 = vmax.f32 %v1790_v36, 0.0  ;;  %v1792_v27 = vadd.f32 %v1791_v40, %v1246_v25  ;;  %v2525_v59 = vpop.permute.xlu1 %325 }
 0x179   :  { %v1546_v46 = vmul.f32 %v2460_v16, %v1322_v10  ;;  %v1323_v23 = vmax.f32 %v1792_v27, 0.0 }
 0x17a   :  { %v1090_v11 = vpop.f32.mrb[36].mxu1  ;;  %v1493_v7 = vpop.permute.xlu0 %1492 }
 0x17b   :  { %v1594_v52 = vsel %vm1562_vm0, %v1546_v46, 0.0  ;;  %v1547_v60 = vmul.f32 %v2462_v20, %v1323_v23  ;;  %v1793_v47 = vadd.f32 %v1090_v11, %v2413_v28  ;;  %v1251_v24 = vpop.f32.mrb[36].mxu0  ;;  %v1092_v15 = vpop.f32.mrb[37].mxu1 }
 0x17c   :  { %v1595_v26 = vadd.f32 %v1594_v52, %v1593_v54  ;;  %v1253_v48 = vpop.f32.mrb[37].mxu0  ;;  %v1093_v12 = vpop.f32.mrb[38].mxu1 }
 0x17d   :  { %v1596_v31 = vsel %vm1562_vm0, %v1547_v60, 0.0  ;;  %v1794_v51 = vadd.f32 %v1793_v47, %v1251_v24  ;;  %v1795_v16 = vadd.f32 %v1093_v12, %v2415_v30  ;;  %v1254_v57 = vpop.f32.mrb[38].mxu0  ;;  %v1095_v0 = vpop.f32.mrb[39].mxu1 }
 0x17e   :  { %v1597_v14 = vadd.f32 %v1596_v31, %v1595_v26  ;;  %v1256_v35 = vpop.f32.mrb[39].mxu0  ;;  %v1498_v15 = vpop.permute.xlu0 %1497 }
 0x17f   :  { %v1324_v22 = vmax.f32 %v1794_v51, 0.0  ;;  %v1796_v6 = vadd.f32 %v1795_v16, %v1254_v57  ;;  %v331_v26 = vpop.permute.xlu1 %330 }
 0x181   :  { %v1548_v20 = vmul.f32 %v2470_v42, %v1324_v22  ;;  %v1325_v28 = vmax.f32 %v1796_v6, 0.0 }
 0x182   :  { %v1098_v37 = vpop.f32.mrb[40].mxu1 }
 0x183   :  { %v1598_v19 = vsel %vm1562_vm0, %v1548_v20, 0.0  ;;  %v1549_v13 = vmul.f32 %v2480_v62, %v1325_v28  ;;  %v1797_v29 = vadd.f32 %v1098_v37, %v2419_v32  ;;  %v1259_v30 = vpop.f32.mrb[40].mxu0  ;;  %v1100_v17 = vpop.f32.mrb[41].mxu1 }
 0x184   :  { %v1599_v39 = vadd.f32 %v1598_v19, %v1597_v14  ;;  %v1261_v56 = vpop.f32.mrb[41].mxu0  ;;  %v1101_v45 = vpop.f32.mrb[42].mxu1 }
 0x185   :  { %v1600_v4 = vsel %vm1562_vm0, %v1549_v13, 0.0  ;;  %v1798_v44 = vadd.f32 %v1797_v29, %v1259_v30  ;;  %v1799_v42 = vadd.f32 %v1101_v45, %v2421_v34  ;;  %v1262_v18 = vpop.f32.mrb[42].mxu0  ;;  %v1103_v41 = vpop.f32.mrb[43].mxu1 }
 0x186   :  { %v1601_v53 = vadd.f32 %v1600_v4, %v1599_v39  ;;  %v1264_v55 = vpop.f32.mrb[43].mxu0  ;;  %v1503_v29 = vpop.permute.xlu0 %1502 }
 0x187   :  { %v1326_v58 = vmax.f32 %v1798_v44, 0.0  ;;  %v1800_v63 = vadd.f32 %v1799_v42, %v1262_v18 }
 0x189   :  { %v1550_v62 = vmul.f32 %v2489_v2, %v1326_v58  ;;  %v1327_v32 = vmax.f32 %v1800_v63, 0.0 }
 0x18a   :  { %v1106_v33 = vpop.f32.mrb[44].mxu1 }
 0x18b   :  { %v1602_v54 = vsel %vm1562_vm0, %v1550_v62, 0.0  ;;  %v1551_v36 = vmul.f32 %v2497_v21, %v1327_v32  ;;  %v1801_v40 = vadd.f32 %v1106_v33, %v2472_v8  ;;  %v1267_v34 = vpop.f32.mrb[44].mxu0  ;;  %v1108_v25 = vpop.f32.mrb[45].mxu1 }
 0x18c   :  { %v1603_v38 = vadd.f32 %v1602_v54, %v1601_v53  ;;  %v1269_v50 = vpop.f32.mrb[45].mxu0  ;;  %v1109_v10 = vpop.f32.mrb[46].mxu1 }
 0x18d   :  { %v1604_v27 = vsel %vm1562_vm0, %v1551_v36, 0.0  ;;  %v1802_v46 = vadd.f32 %v1801_v40, %v1267_v34  ;;  %v1803_v2 = vadd.f32 %v1109_v10, %v2482_v1  ;;  %v1270_v23 = vpop.f32.mrb[46].mxu0  ;;  %v1111_v11 = vpop.f32.mrb[47].mxu1 }
 0x18e   :  { %v1605_v52 = vadd.f32 %v1604_v27, %v1603_v38  ;;  %v1272_v60 = vpop.f32.mrb[47].mxu0  ;;  %v1508_v54 = vpop.permute.xlu0 %1507 }
 0x18f   :  { %v1328_v47 = vmax.f32 %v1802_v46, 0.0  ;;  %v1804_v24 = vadd.f32 %v1803_v2, %v1270_v23 }
 0x191   :  { %v1552_v21 = vmul.f32 %v2506_v49, %v1328_v47  ;;  %v1329_v8 = vmax.f32 %v1804_v24, 0.0 }
 0x192   :  { %v1114_v48 = vpop.f32.mrb[48].mxu1 }
 0x193   :  { %v1606_v12 = vsel %vm1562_vm0, %v1552_v21, 0.0  ;;  %v1553_v31 = vmul.f32 %v1488_v43, %v1329_v8  ;;  %v1805_v51 = vadd.f32 %v1114_v48, %v2491_v9  ;;  %v1275_v16 = vpop.f32.mrb[48].mxu0  ;;  %v1116_v57 = vpop.f32.mrb[49].mxu1 }
 0x194   :  { %v1607_v1 = vadd.f32 %v1606_v12, %v1605_v52  ;;  %v1277_v0 = vpop.f32.mrb[49].mxu0  ;;  %v1117_v14 = vpop.f32.mrb[50].mxu1 }
 0x195   :  { %v1608_v35 = vsel %vm1562_vm0, %v1553_v31, 0.0  ;;  %v1806_v22 = vadd.f32 %v1805_v51, %v1275_v16  ;;  %v1807_v6 = vadd.f32 %v1117_v14, %v2499_v5  ;;  %v1278_v20 = vpop.f32.mrb[50].mxu0  ;;  %v1119_v49 = vpop.f32.mrb[51].mxu1 }
 0x196   :  { %v1609_v28 = vadd.f32 %v1608_v35, %v1607_v1  ;;  %v1280_v37 = vpop.f32.mrb[51].mxu0  ;;  %v336_v9 = vpop.permute.xlu1 %335 }
 0x197   :  { %v1330_v19 = vmax.f32 %v1806_v22, 0.0  ;;  %v1808_v13 = vadd.f32 %v1807_v6, %v1278_v20  ;;  %v1513_v48 = vpop.permute.xlu0 %1512 }
 0x199   :  { %v1554_v43 = vmul.f32 %v1493_v7, %v1330_v19  ;;  %v1331_v30 = vmax.f32 %v1808_v13, 0.0 }
 0x19a   :  { %v1122_v17 = vpop.f32.mrb[52].mxu1 }
 0x19b   :  { %v1610_v39 = vsel %vm1562_vm0, %v1554_v43, 0.0  ;;  %v1555_v56 = vmul.f32 %v1498_v15, %v1331_v30  ;;  %v1809_v45 = vadd.f32 %v1122_v17, %v2509_v61  ;;  %v1283_v4 = vpop.f32.mrb[52].mxu0  ;;  %v1124_v44 = vpop.f32.mrb[53].mxu1 }
 0x19c   :  { %v1611_v42 = vadd.f32 %v1610_v39, %v1609_v28  ;;  %v1285_v5 = vpop.f32.mrb[53].mxu0  ;;  %v1125_v18 = vpop.f32.mrb[54].mxu1 }
 0x19d   :  { %v1612_v41 = vsel %vm1562_vm0, %v1555_v56, 0.0  ;;  %v1810_v53 = vadd.f32 %v1809_v45, %v1283_v4  ;;  %v1811_v55 = vadd.f32 %v1125_v18, %v2517_v3  ;;  %v1286_v58 = vpop.f32.mrb[54].mxu0  ;;  %v1127_v63 = vpop.f32.mrb[55].mxu1 }
 0x19e   :  { %v1613_v7 = vadd.f32 %v1612_v41, %v1611_v42  ;;  %v1288_v62 = vpop.f32.mrb[55].mxu0  ;;  %v341_v61 = vpop.permute.xlu1 %340 }
 0x19f   :  { %v1332_v32 = vmax.f32 %v1810_v53, 0.0  ;;  %v1812_v33 = vadd.f32 %v1811_v55, %v1286_v58  ;;  %v1523_v30 = vpop.permute.xlu0 %1522  ;;  %v1633_v58 = vstv %s2567_s4 }
 0x1a1   :  { %v1556_v36 = vmul.f32 %v1503_v29, %v1332_v32  ;;  %v1333_v40 = vmax.f32 %v1812_v33, 0.0 }
 0x1a2   :  { %v1130_v34 = vpop.f32.mrb[56].mxu1  ;;  %v1518_v51 = vpop.permute.xlu1 %1517 }
 0x1a3   :  { %v1614_v25 = vsel %vm1562_vm0, %v1556_v36, 0.0  ;;  %v1557_v38 = vmul.f32 %v1508_v54, %v1333_v40  ;;  %v1813_v50 = vadd.f32 %v1130_v34, %v2525_v59  ;;  %v1291_v10 = vpop.f32.mrb[56].mxu0  ;;  %v1132_v27 = vpop.f32.mrb[57].mxu1 }
 0x1a4   :  { %v1615_v46 = vadd.f32 %v1614_v25, %v1613_v7  ;;  %v1293_v3 = vpop.f32.mrb[57].mxu0  ;;  %v1133_v2 = vpop.f32.mrb[58].mxu1 }
 0x1a5   :  { %v1616_v23 = vsel %vm1562_vm0, %v1557_v38, 0.0  ;;  %v1814_v11 = vadd.f32 %v1813_v50, %v1291_v10  ;;  %v1815_v52 = vadd.f32 %v1133_v2, %v331_v26  ;;  %v1294_v60 = vpop.f32.mrb[58].mxu0  ;;  %v1135_v47 = vpop.f32.mrb[59].mxu1 }
 0x1a6   :  { %v1617_v24 = vadd.f32 %v1616_v23, %v1615_v46  ;;  %v1296_v15 = vpop.f32.mrb[59].mxu0  ;;  %v1528_v56 = vpop.permute.xlu1 %1527 }
 0x1a7   :  { %v1334_v21 = vmax.f32 %v1814_v11, 0.0  ;;  %v1816_v8 = vadd.f32 %v1815_v52, %v1294_v60 }
 0x1a9   :  { %v1558_v12 = vmul.f32 %v1513_v48, %v1334_v21  ;;  %v1335_v31 = vmax.f32 %v1816_v8, 0.0 }
 0x1aa   :  { %v1138_v59 = vpop.f32.mrb[60].mxu1 }
 0x1ab   :  { %v1618_v16 = vsel %vm1562_vm0, %v1558_v12, 0.0  ;;  %v1559_v57 = vmul.f32 %v1518_v51, %v1335_v31  ;;  %v1817_v1 = vadd.f32 %v1138_v59, %v336_v9  ;;  %v1299_v0 = vpop.f32.mrb[60].mxu0  ;;  %v1140_v14 = vpop.f32.mrb[61].mxu1 }
 0x1ac   :  { %v1619_v35 = vadd.f32 %v1618_v16, %v1617_v24  ;;  %v1301_v22 = vpop.f32.mrb[61].mxu0  ;;  %v1141_v26 = vpop.f32.mrb[62].mxu1 }
 0x1ad   :  { %v1620_v6 = vsel %vm1562_vm0, %v1559_v57, 0.0  ;;  %v1818_v20 = vadd.f32 %v1817_v1, %v1299_v0  ;;  %v1819_v49 = vadd.f32 %v1141_v26, %v341_v61  ;;  %v1302_v28 = vpop.f32.mrb[62].mxu0  ;;  %v1143_v37 = vpop.f32.mrb[63].mxu1 }
 0x1ae   :  { %v1621_v19 = vadd.f32 %v1620_v6, %v1619_v35  ;;  %v1304_v13 = vpop.f32.mrb[63].mxu0 }
 0x1af   :  { %v1336_v29 = vmax.f32 %v1818_v20, 0.0  ;;  %v1820_v43 = vadd.f32 %v1819_v49, %v1302_v28 }
 0x1b1   :  { %v1560_v17 = vmul.f32 %v1523_v30, %v1336_v29  ;;  %v1337_v39 = vmax.f32 %v1820_v43, 0.0 }
 0x1b3   :  { %v1622_v9 = vsel %vm1562_vm0, %v1560_v17, 0.0  ;;  %v1561_v45 = vmul.f32 %v1528_v56, %v1337_v39 }
 0x1b4   :  { %v1623_v4 = vadd.f32 %v1622_v9, %v1621_v19 }
 0x1b5   :  { %v1624_v44 = vsel %vm1562_vm0, %v1561_v45, 0.0 }
 0x1b6   :  { %v1625_v42 = vadd.f32 %v1624_v44, %v1623_v4 }
 0x1b8   :  { %v1626_v5 = vrot.slane %v1625_v42, 4 }
 0x1ba   :  { %v1627_v18 = vadd.f32 %v1626_v5, %v1625_v42 }
 0x1bc   :  { %v1628_v41 = vrot.slane %v1627_v18, 2 }
 0x1be   :  { %v1629_v53 = vadd.f32 %v1628_v41, %v1627_v18 }
 0x1c0   :  { %v1630_v55 = vrot.slane %v1629_v53, 1 }
 0x1c2   :  { %v1631_v63 = vadd.f32 %v1630_v55, %v1629_v53 }
 0x1c4   :  { %v1634_v7 = vadd.f32 %v1633_v58, %v1631_v63 }
 0x1c6   :  { %v1754_v62 = vmul.f32 -1.442695, %v1634_v7 }
 0x1c8   :  { %2036 = vpow2.f32 %v1754_v62 }
 0x1d2   :  { %v2037_v32 = vpop.eup %2036 }
 0x1d3   :  { %v1638_v33 = vadd.f32 1.0, %v2037_v32 }
 0x1d5   :  { %2038 = vrcp.f32 %v1638_v33 }
 0x1df   :  { %v2039_v54 = vpop.eup %2038 }
 0x1e0   :  { %1642 = vst.msk [vmem:[#allocation6] sm:$0x1] %vm1641_vm1, %v2039_v54 }
 0x1e1   :  { %2073 = shalt.err (!%p2070_p12)
}
 0x1e2   :  { %s2074_s28 = scalar_lea.hbm %s2568_s5, 16 }
 0x1e3   :  { %p2075_p13 = scmp.ne.s32.totalorder %s2568_s5, %s2074_s28  ;;  %p2078_p0 = scmp.lt.u32.totalorder %s2074_s28, %s2568_s5 }
 0x1e5   :  { %p2080_p1 = pnand %p2078_p0, %p2075_p13 }
 0x1e7   :  { %2083 = shalt.err (!%p2080_p1)
}
 0x1e8   :  { %1652 = dma.vmem_to_hbm [thread:$0]  %s1650_s24, 16, %s2568_s5, [#allocation5]  }
 0x1e9   :  { %2086 = dma.done.wait [#allocation5], 16  }
 0x1ea   :  { %2087 = vsyncadd [#allocation5], 4294967280 }
 0x1eb   :  { %1656 = vsyncpa [#allocation4], 1 }
 0x1ec   :  { %1657 = vsyncpa [#allocation5], 1 }

</bundles_post_ra>
